<compile_context>
chip_gen: v7x
topology: tpu7x:2x2x1
jax: 0.10.0
libtpu: 0.0.40
codegen_flags: <defaults>
</compile_context>

<pallas_src>
import jax
import jax.numpy as jnp
from jax.experimental import pallas as pl
from jax.experimental.pallas import tpu as pltpu

K = 128
EDGE_TYPES = 1024
EPS = 1e-5


def _round_up(x, m):
    return ((x + m - 1) // m) * m


def gaussian_kernel(val_ref, params_ref, o_ref):
    # val_ref:    (tm, 1) f32  -- mul * x + bias, precomputed in wrapper
    # params_ref: (8, K)  f32, grid-resident:
    #   row 0 = mean, row 1 = c1 = inv_std*sqrt(0.5), row 2 = coeff = inv_std/sqrt(2*pi)
    val = val_ref[...]
    p = params_ref[...]
    mean = p[0:1, :]
    c1 = p[1:2, :]
    coeff = p[2:3, :]

    z = (val - mean) * c1                 # broadcast -> (tm, K), VPU only
    o_ref[...] = jnp.exp(-(z * z)) * coeff   # single EUP op per element


def gaussian_layer_pallas(x, edge_type, means_w, stds_w, mul_w, bias_w,
                          *, tm=8192):
    """x: [B, N, N] float, edge_type: [B, N, N] int.
    means_w, stds_w: [1, K]; mul_w, bias_w: [EDGE_TYPES, 1].
    Returns [B, N, N, K] float32 (matches torch: gaussian(x.float(), ...))."""
    B, N, _ = x.shape
    M = B * N * N

    # --- glue: embedding gathers + fused affine, flattened to one column ---
    et_flat = edge_type.reshape(M)
    mul_flat = mul_w[et_flat, 0].astype(jnp.float32)
    bias_flat = bias_w[et_flat, 0].astype(jnp.float32)
    val_flat = (mul_flat * x.astype(jnp.float32).reshape(M)
                + bias_flat).reshape(M, 1)

    # --- hoist all std math out of the per-element path ---
    mean = means_w.astype(jnp.float32).reshape(1, K)
    std = jnp.abs(stds_w.astype(jnp.float32).reshape(1, K)) + EPS
    inv_std = 1.0 / std
    a = (2.0 * 3.14159) ** 0.5           # matches torch literal; do not "fix"
    coeff = inv_std / a                  # 1 / (sqrt(2*pi) * std)
    c1 = inv_std * (0.5 ** 0.5)          # so exp(-(z*z)) == exp(-0.5*((v-m)/s)^2)
    params = jnp.zeros((8, K), jnp.float32)
    params = params.at[0:1, :].set(mean)
    params = params.at[1:2, :].set(c1)
    params = params.at[2:3, :].set(coeff)

    # --- tiling: big row tiles, partial last block clipped by Pallas ---
    # Force >= 2 grid steps so "parallel" can shard across v7x's 2 TensorCores.
    tm_eff = max(8, min(tm, _round_up(pl.cdiv(M, 2), 8)))
    grid = pl.cdiv(M, tm_eff)

    out = pl.pallas_call(
        gaussian_kernel,
        out_shape=jax.ShapeDtypeStruct((M, K), jnp.float32),
        grid_spec=pl.GridSpec(
            grid=(grid,),
            in_specs=[
                pl.BlockSpec((tm_eff, 1), lambda i: (i, 0)),  # fused val
                pl.BlockSpec((8, K), lambda i: (0, 0)),       # mean/c1/coeff
            ],
            out_specs=pl.BlockSpec((tm_eff, K), lambda i: (i, 0)),
        ),
        compiler_params=pltpu.CompilerParams(
            dimension_semantics=("parallel",)),
        cost_estimate=pl.CostEstimate(
            flops=5 * M * K,
            transcendentals=M * K,
            bytes_accessed=M * K * 4 + M * 4 + 8 * K * 4),
    )(val_flat, params)

    return out.reshape(B, N, N, K)


def gaussian_layer_ref(x, edge_type, means_w, stds_w, mul_w, bias_w):
    mul = mul_w[edge_type]                       # [B,N,N,1]
    bias = bias_w[edge_type]                     # [B,N,N,1]
    v = mul * x[..., None] + bias                # [B,N,N,1]
    v = jnp.broadcast_to(v, v.shape[:-1] + (K,)).astype(jnp.float32)
    mean = means_w.astype(jnp.float32).reshape(-1)
    std = jnp.abs(stds_w.astype(jnp.float32).reshape(-1)) + EPS
    pi = 3.14159
    a = (2 * pi) ** 0.5
    return jnp.exp(-0.5 * ((v - mean) / std) ** 2) / (a * std)


if __name__ == "__main__":
    key = jax.random.PRNGKey(0)
    k1, k2, k3, k4, k5, k6 = jax.random.split(key, 6)

    # deterministic parameter init (matches nn.init in __init__)
    means_w = jax.random.uniform(k1, (1, K), jnp.float32, 0.0, 3.0)
    stds_w = jax.random.uniform(k2, (1, K), jnp.float32, 0.0, 3.0)
    mul_w = jnp.ones((EDGE_TYPES, 1), jnp.float32)
    bias_w = jnp.zeros((EDGE_TYPES, 1), jnp.float32)

    # case 1: batch=2, seq=8  ->  M = 128 rows (splits into 2 grid steps)
    B, N = 2, 8
    x = jax.random.uniform(k3, (B, N, N), jnp.float32, 0.0, 10.0)
    edge_type = jax.random.randint(k4, (B, N, N), 0, EDGE_TYPES, jnp.int32)
    out = jax.block_until_ready(
        gaussian_layer_pallas(x, edge_type, means_w, stds_w, mul_w, bias_w))
    ref = gaussian_layer_ref(x, edge_type, means_w, stds_w, mul_w, bias_w)
    assert out.shape == (B, N, N, K)
    assert jnp.allclose(out, ref, atol=1e-5, rtol=1e-5)

    # case 2: non-power-of-two seq -> M = 2*9*9 = 162 (exercises the clipped
    # partial last block: tm_eff does not divide M)
    B2, N2 = 2, 9
    x2 = jax.random.uniform(k5, (B2, N2, N2), jnp.float32, 0.0, 10.0)
    edge_type2 = jax.random.randint(k6, (B2, N2, N2), 0, EDGE_TYPES, jnp.int32)
    out2 = jax.block_until_ready(
        gaussian_layer_pallas(x2, edge_type2, means_w, stds_w, mul_w, bias_w))
    ref2 = gaussian_layer_ref(x2, edge_type2, means_w, stds_w, mul_w, bias_w)
    assert out2.shape == (B2, N2, N2, K)
    assert jnp.allclose(out2, ref2, atol=1e-5, rtol=1e-5)

    print("KERNEL_OK")
</pallas_src>

<mosaic_0001>
module attributes {stable_mosaic.version = 11 : i64} {
  func.func @gaussian_kernel(%arg0: i32, %arg1: memref<64x1xf32, #tpu.memory_space<vmem>>, %arg2: memref<8x128xf32, #tpu.memory_space<vmem>>, %arg3: memref<64x128xf32, #tpu.memory_space<vmem>>) attributes {dimension_semantics = [#tpu.dimension_semantics<parallel>], iteration_bounds = array<i64: 2>, scalar_prefetch = 0 : i64, scratch_operands = 0 : i64, tpu.core_type = #tpu.core_type<tc>, window_params = [{transform_indices = @transform_0, window_bounds = array<i64: 64, 1>}, {pipeline_mode = #tpu.pipeline_mode<synchronous>, transform_indices = @transform_1, window_bounds = array<i64: 8, 128>}, {transform_indices = @transform_2, window_bounds = array<i64: 64, 128>}]} {
    %c0 = arith.constant 0 : index
    %c0_0 = arith.constant 0 : index
    %0 = vector.load %arg1[%c0, %c0_0] : memref<64x1xf32, #tpu.memory_space<vmem>>, vector<64x1xf32>
    %c0_1 = arith.constant 0 : index
    %c0_2 = arith.constant 0 : index
    %1 = vector.load %arg2[%c0_1, %c0_2] : memref<8x128xf32, #tpu.memory_space<vmem>>, vector<8x128xf32>
    %2 = vector.extract_strided_slice %1 {offsets = [0, 0], sizes = [1, 128], strides = [1, 1]} : vector<8x128xf32> to vector<1x128xf32>
    %3 = vector.extract_strided_slice %1 {offsets = [1, 0], sizes = [1, 128], strides = [1, 1]} : vector<8x128xf32> to vector<1x128xf32>
    %4 = vector.extract_strided_slice %1 {offsets = [2, 0], sizes = [1, 128], strides = [1, 1]} : vector<8x128xf32> to vector<1x128xf32>
    %5 = vector.broadcast %0 : vector<64x1xf32> to vector<64x128xf32>
    %6 = vector.broadcast %2 : vector<1x128xf32> to vector<64x128xf32>
    %7 = arith.subf %5, %6 : vector<64x128xf32>
    %8 = vector.broadcast %3 : vector<1x128xf32> to vector<64x128xf32>
    %9 = arith.mulf %7, %8 : vector<64x128xf32>
    %10 = arith.mulf %9, %9 : vector<64x128xf32>
    %cst = arith.constant 0.000000e+00 : f32
    %11 = vector.broadcast %cst : f32 to vector<64x128xf32>
    %12 = arith.subf %11, %10 : vector<64x128xf32>
    %13 = math.exp %12 : vector<64x128xf32>
    %14 = vector.broadcast %4 : vector<1x128xf32> to vector<64x128xf32>
    %15 = arith.mulf %13, %14 : vector<64x128xf32>
    %c0_3 = arith.constant 0 : index
    %c0_4 = arith.constant 0 : index
    %16 = vector.load %arg3[%c0_3, %c0_4] : memref<64x128xf32, #tpu.memory_space<vmem>>, vector<64x128xf32>
    tpu.vector_store %arg3[%c0_3, %c0_4], %15 {strides = array<i32>} : memref<64x128xf32, #tpu.memory_space<vmem>>, vector<64x128xf32>,
    return
  }
  func.func @transform_0(%arg0: i32) -> (i32, i32) {
    %c0_i32 = arith.constant 0 : i32
    %c0_i32_0 = arith.constant 0 : i32
    return %arg0, %c0_i32 : i32, i32
  }
  func.func @transform_1(%arg0: i32) -> (i32, i32) {
    %c0_i32 = arith.constant 0 : i32
    %c0_i32_0 = arith.constant 0 : i32
    %c0_i32_1 = arith.constant 0 : i32
    return %c0_i32, %c0_i32_0 : i32, i32
  }
  func.func @transform_2(%arg0: i32) -> (i32, i32) {
    %c0_i32 = arith.constant 0 : i32
    %c0_i32_0 = arith.constant 0 : i32
    return %arg0, %c0_i32 : i32, i32
  }
}

</mosaic_0001>

<bundles_post_ra>
// kernel: tpu_custom_call.1
= control target key start
LH: loop header
LB: loop body
LE: loop exit
PB: predicated region body
PF: predicated region fallthrough
CT: control target
= control target key end

     0   :  { %7 = vsyncpa [#allocation3], 0  ;;  %s611_s0 = inlined_call_operand.vmem [shape: f32[128,1], index: 0, kind: input, shape index: {}]   ;;  %s612_s1 = inlined_call_operand.vmem [shape: f32[8,128], index: 1, kind: input, shape index: {}]   ;;  %s613_s2 = inlined_call_operand.hbm [shape: f32[128,128], index: 2, kind: output, shape index: {}]  }
   0x1   :  { %9 = vsyncpa [#allocation3 + $0x1], 0  ;;  %s502_s9 = smov 0   ;;  %s504_s10 = smov 0  }
   0x2   :  { %s506_s11 = smov 0   ;;  %s508_s12 = smov 0  }
   0x3 LB: > { %s523_s13 = sadd.s32 4294967295, %s481_s12   ;;  %s346_s14 = sadd.s32 4294967294, %s481_s12   ;;  %s481_s12 = sphi %s508_s12, %s619_s12   ;;  %s477_s11 = sphi %s506_s11, %s618_s11   ;;  %s473_s10 = sphi %s504_s10, %s617_s10   ;;  %s469_s9 = sphi %s502_s9, %s616_s9  }
   0x4   : > { %s527_s15 = sadd.s32 1, %s481_s12   ;;  %s69_s16 = sadd.s32 1, %s477_s11 }
   0x5   : > { %s66_s17 = ssub.s32 %s481_s12, %s527_s15  ;;  %p79_p0 = scmp.ne.s32.totalorder %s477_s11, %s473_s10 }
   0x6   : > { %p67_p1 = scmp.eq.s32.totalorder %s66_s17, 0  ;;  %p80_p2 = scmp.eq.s32.totalorder %s523_s13, 1 }
   0x7   : > { %p85_p3 = scmp.ne.s32.totalorder %s473_s10, %s469_s9  ;;  %p86_p4 = scmp.eq.s32.totalorder %s346_s14, 1 }
   0x8   : > { %s538_s18 = scalar_select %p67_p1, %s477_s11, %s69_s16  }
   0x9   : > { %p540_p5 = por %p80_p2, %p79_p0  ;;  %p544_p6 = por %p86_p4, %p85_p3 }
   0xa   : > { %p349_p7 = scmp.ge.s32.totalorder %s481_s12, 1  ;;  %p116_p8 = scmp.lt.s32.totalorder %s481_s12, 3 }
   0xc   : > { %p117_p9 = pnand %p349_p7, %p116_p8 }
   0xd   : > { %s351_s21 = sshll.u32 (!%p117_p9), %s523_s13, 3  ;;  %v483_v0 = vmov (!%p117_p9), 0   ;;  %v194_v9 = vlaneseq (!%p117_p9)  ;;  %v153_v12 = vld [vmem:[%s612_s1] sm:$0xff] (!%p117_p9)  ;;  %s135_s28 = sand.u32 (!%p117_p9), 1, %s473_s10  }
   0xe   : > { %120 = sbr.rel (%p117_p9) target bundleno = 204 (0xcc), region = 28  ;;  %402 = vset.pattern.permute.xlu1 (!%p117_p9), %v483_v0  ;;  %401 = vset.pattern.permute.xlu0 (!%p117_p9), %v483_v0  ;;  %p139_p10 = scmp.lt.s32.totalorder (!%p117_p9), %s351_s21, 15 }
   0xf   : > { %v195_v10 = vshrl.u32 (!%p117_p9), %v194_v9, 7  ;;  %s350_s29 = sshll.u32 (!%p117_p9), %s135_s28, 6  ;;  %s358_s3 = sshll.u32 (!%p117_p9), %s523_s13, 10 }
  0x10   : > { %s137_s30 = scalar_lea.vmem (!%p117_p9), [#allocation2], %s350_s29  ;;  %s564_s7 = scalar_lea.hbm (!%p117_p9), %s613_s2, %s358_s3 }
  0x11   : > { %v196_v11 = vsub.s32 (!%p117_p9), 0, %v195_v10  ;;  %v208_v13 = vsub.s32 (!%p117_p9), 1, %v195_v10  ;;  %v252_v50 = vsub.s32 (!%p117_p9), 2, %v195_v10  ;;  %s284_s4 = sshll.u32 (!%p117_p9), %s137_s30, 4  ;;  %s570_s8 = scalar_lea.sflag (!%p117_p9), [#allocation3], %s135_s28  ;;  %s566_s4 = int_to_ptr.vmem [resolvable:$true] %s284_s4 }
  0x12   : > { %s419_s13 = scalar_lea.vmem (!%p117_p9), %s566_s4, 1024  ;;  %s484_s14 = smov (!%p117_p9), [#allocation2]  }
  0x13   : > { %v197_v14 = vrot.slane (!%p117_p9), %v153_v12, %v196_v11  ;;  %v209_v15 = vrot.slane (!%p117_p9), %v153_v12, %v208_v13  ;;  %v253_v59 = vrot.slane (!%p117_p9), %v153_v12, %v252_v50  ;;  %p420_p11 = scmp.ne.s32.totalorder (!%p117_p9), %s566_s4, %s419_s13  ;;  %s423_s16 = sshll.u32 (!%p117_p9), %s484_s14, 4  ;;  %s424_s16 = int_to_ptr.vmem [resolvable:$false] %s423_s16 }
  0x14   : > { %s425_s17 = scalar_lea.vmem (!%p117_p9), %s424_s16, 2048  ;;  %p426_p0 = scmp.lt.s32.totalorder (!%p117_p9), %s566_s4, %s424_s16 }
  0x15   : > { %s621_s21 = smov (!%p139_p10, %s351_s21), 15  ;;  %p421_p12 = pnand %p420_p11, %p540_p5 }
  0x16   : > { %s352_s22 = sshll.u32 %s621_s21, 3  ;;  %p427_p1 = scmp.lt.s32.totalorder %s425_s17, %s419_s13 }
  0x17   : > { %s142_s25 = scalar_lea.vmem %s611_s0, %s352_s22  ;;  %p422_p13 = pneg %p421_p12 }
  0x18   : > { %v147_v1 = vld [vmem:[%s142_s25 + $0x10] sm:$0xff]  ;;  %v145_v2 = vld [vmem:[%s142_s25] sm:$0xff]  ;;  %v148_v3 = vld [vmem:[%s142_s25 + $0x18] sm:$0xff]  ;;  %p428_p2 = por %p427_p1, %p426_p0 }
  0x19   : > { %166 = vperm.xlu1 %402, %v147_v1   ;;  %156 = vperm.xlu0 %401, %v145_v2   ;;  %v146_v4 = vld [vmem:[%s142_s25 + $0x8] sm:$0xff]  ;;  %v149_v6 = vld [vmem:[%s142_s25 + $0x20] sm:$0xff]  ;;  %v152_v7 = vld [vmem:[%s142_s25 + $0x38] sm:$0xff] }
  0x1a   : > { %v150_v5 = vld [vmem:[%s142_s25 + $0x28] sm:$0xff]  ;;  %v151_v8 = vld [vmem:[%s142_s25 + $0x30] sm:$0xff]  ;;  %p429_p3 = pnand %p428_p2, %p422_p13 }
  0x1d   : > { %171 = vperm.xlu1 %402, %v148_v3   ;;  %161 = vperm.xlu0 %401, %v146_v4  }
  0x21   : > { %181 = vperm.xlu1 %402, %v150_v5   ;;  %176 = vperm.xlu0 %401, %v149_v6  }
  0x25   : > { %191 = vperm.xlu1 %402, %v152_v7   ;;  %186 = vperm.xlu0 %401, %v151_v8  }
  0x98   : > { %v167_v16 = vpop.permute.xlu1 %166  ;;  %v157_v17 = vpop.permute.xlu0 %156 }
  0x99   : > { %v200_v18 = vsub.f32 %v167_v16, %v197_v14  ;;  %v198_v19 = vsub.f32 %v157_v17, %v197_v14 }
  0x9b   : > { %v212_v20 = vmul.f32 %v209_v15, %v200_v18  ;;  %v210_v21 = vmul.f32 %v209_v15, %v198_v19 }
  0x9c   : > { %v172_v22 = vpop.permute.xlu1 %171  ;;  %v162_v23 = vpop.permute.xlu0 %161 }
  0x9d   : > { %v220_v24 = vmul.f32 %v212_v20, %v212_v20  ;;  %v218_v25 = vmul.f32 %v210_v21, %v210_v21  ;;  %v201_v26 = vsub.f32 %v172_v22, %v197_v14  ;;  %v199_v27 = vsub.f32 %v162_v23, %v197_v14 }
  0x9f   : > { %v228_v28 = vsub.f32 0.0, %v220_v24  ;;  %v226_v29 = vsub.f32 0.0, %v218_v25  ;;  %v213_v30 = vmul.f32 %v209_v15, %v201_v26  ;;  %v211_v31 = vmul.f32 %v209_v15, %v199_v27 }
  0xa0   : > { %v182_v32 = vpop.permute.xlu1 %181  ;;  %v177_v33 = vpop.permute.xlu0 %176 }
  0xa1   : > { %v238_v34 = vmul.f32 1.442695, %v228_v28  ;;  %v234_v35 = vmul.f32 1.442695, %v226_v29  ;;  %v221_v36 = vmul.f32 %v213_v30, %v213_v30  ;;  %v219_v37 = vmul.f32 %v211_v31, %v211_v31 }
  0xa2   : > { %v203_v38 = vsub.f32 %v182_v32, %v197_v14  ;;  %v202_v39 = vsub.f32 %v177_v33, %v197_v14 }
  0xa3   : > { %403 = vpow2.f32 %v238_v34  ;;  %v229_v40 = vsub.f32 0.0, %v221_v36  ;;  %v227_v41 = vsub.f32 0.0, %v219_v37 }
  0xa4   : > { %405 = vpow2.f32 %v234_v35  ;;  %v215_v42 = vmul.f32 %v209_v15, %v203_v38  ;;  %v214_v43 = vmul.f32 %v209_v15, %v202_v39  ;;  %v192_v44 = vpop.permute.xlu1 %191  ;;  %v187_v45 = vpop.permute.xlu0 %186 }
  0xa5   : > { %v240_v46 = vmul.f32 1.442695, %v229_v40  ;;  %v236_v47 = vmul.f32 1.442695, %v227_v41  ;;  %v205_v48 = vsub.f32 %v192_v44, %v197_v14  ;;  %v204_v49 = vsub.f32 %v187_v45, %v197_v14 }
  0xa6   : > { %v223_v51 = vmul.f32 %v215_v42, %v215_v42  ;;  %v222_v52 = vmul.f32 %v214_v43, %v214_v43 }
  0xa7   : > { %407 = vpow2.f32 %v240_v46  ;;  %v217_v53 = vmul.f32 %v209_v15, %v205_v48  ;;  %v216_v54 = vmul.f32 %v209_v15, %v204_v49 }
  0xa8   : > { %409 = vpow2.f32 %v236_v47  ;;  %v231_v55 = vsub.f32 0.0, %v223_v51  ;;  %v230_v56 = vsub.f32 0.0, %v222_v52 }
  0xa9   : > { %v225_v57 = vmul.f32 %v217_v53, %v217_v53  ;;  %v224_v58 = vmul.f32 %v216_v54, %v216_v54 }
  0xaa   : > { %v244_v60 = vmul.f32 1.442695, %v231_v55  ;;  %v242_v61 = vmul.f32 1.442695, %v230_v56 }
  0xab   : > { %v233_v62 = vsub.f32 0.0, %v225_v57  ;;  %v232_v63 = vsub.f32 0.0, %v224_v58 }
  0xac   : > { %411 = vpow2.f32 %v244_v60 }
  0xad   : > { %v404_v0 = vpop.eup %403  ;;  %413 = vpow2.f32 %v242_v61  ;;  %v248_v1 = vmul.f32 1.442695, %v233_v62  ;;  %v246_v2 = vmul.f32 1.442695, %v232_v63 }
  0xae   : > { %v406_v3 = vpop.eup %405  ;;  %v256_v4 = vmul.f32 %v404_v0, %v253_v59 }
  0xaf   : > { %v254_v5 = vmul.f32 %v406_v3, %v253_v59  ;;  %415 = vpow2.f32 %v248_v1 }
  0xb0   : > { %264 = vst [vmem:[%s137_s30 + $0x10] sm:$0xff] %v256_v4  ;;  %417 = vpow2.f32 %v246_v2 }
  0xb1   : > { %v408_v6 = vpop.eup %407  ;;  %262 = vst [vmem:[%s137_s30] sm:$0xff] %v254_v5 }
  0xb2   : > { %v410_v7 = vpop.eup %409  ;;  %v257_v8 = vmul.f32 %v408_v6, %v253_v59 }
  0xb3   : > { %v255_v9 = vmul.f32 %v410_v7, %v253_v59 }
  0xb4   : > { %265 = vst [vmem:[%s137_s30 + $0x18] sm:$0xff] %v257_v8 }
  0xb5   : > { %263 = vst [vmem:[%s137_s30 + $0x8] sm:$0xff] %v255_v9 }
  0xb6   : > { %v412_v10 = vpop.eup %411 }
  0xb7   : > { %v414_v11 = vpop.eup %413  ;;  %v259_v12 = vmul.f32 %v412_v10, %v253_v59 }
  0xb8   : > { %v258_v13 = vmul.f32 %v414_v11, %v253_v59 }
  0xb9   : > { %v416_v14 = vpop.eup %415  ;;  %267 = vst [vmem:[%s137_s30 + $0x28] sm:$0xff] %v259_v12 }
  0xba   : > { %v418_v15 = vpop.eup %417  ;;  %266 = vst [vmem:[%s137_s30 + $0x20] sm:$0xff] %v258_v13  ;;  %v261_v16 = vmul.f32 %v416_v14, %v253_v59 }
  0xbb   : > { %v260_v17 = vmul.f32 %v418_v15, %v253_v59 }
  0xbc   : > { %269 = vst [vmem:[%s137_s30 + $0x38] sm:$0xff] %v261_v16 }
  0xbd   : > { %268 = vst [vmem:[%s137_s30 + $0x30] sm:$0xff] %v260_v17 }
  0xbe   : > { %432 = shalt.err (!%p429_p3)
}
  0xbf   : > { %s433_s21 = scalar_lea.hbm %s564_s7, 1024  ;;  %s437_s24 = scalar_lea.hbm %s613_s2, 2048 }
  0xc0   : > { %p434_p4 = scmp.ne.s32.totalorder %s564_s7, %s433_s21  ;;  %p438_p9 = scmp.lt.u32.totalorder %s564_s7, %s613_s2 }
  0xc1   : > { %p439_p10 = scmp.lt.u32.totalorder %s437_s24, %s433_s21  ;;  %p441_p12 = scmp.lt.u32.totalorder %s433_s21, %s564_s7 }
  0xc2   : > { %p435_p7 = pnand %p434_p4, %p540_p5 }
  0xc3   : > { %p440_p11 = por %p439_p10, %p438_p9 }
  0xc4   : > { %p436_p8 = pneg %p435_p7 }
  0xc5   : > { %p442_p13 = por %p441_p12, %p440_p11 }
  0xc7   : > { %p443_p0 = pnand %p442_p13, %p436_p8 }
  0xc9   : > { %446 = shalt.err (!%p443_p0)
}
  0xca   : > { %s485_s27 = smov 128   ;;  %s486_s28 = smov 8  }
  0xcb   : > { %359 = dma.vmem_to_hbm [thread:$0]  (%p540_p5), %s566_s4, 1024, %s564_s7, %s570_s8, %s485_s27, %s485_s27, %s486_s28  }
  0xcc PF: > { %p365_p1 = scmp.ge.s32.totalorder %s481_s12, 2  ;;  %s299_s29 = sand.u32 1, %s469_s9  }
  0xcd   : > { %s300_s30 = scalar_lea.sflag [#allocation3], %s299_s29 }
  0xce   : > { %p362_p2 = pnand %p365_p1, %p544_p6 }
  0xd0   : > { %464 = dma.done.wait (!%p362_p2), %s300_s30, 1024  }
  0xd1   : > { %466 = vsyncadd (!%p362_p2), %s300_s30, 4294966272  ;;  %p12_p3 = scmp.ge.s32.totalorder %s527_s15, 4   ;;  %s616_s9 = smov %s473_s10 }
  0xd2   : > { %s617_s10 = smov %s477_s11  ;;  %s618_s11 = smov %s538_s18 }
  0xd3   : > { %s619_s12 = smov %s527_s15  ;;  %14 = sbr.rel (!%p12_p3) target bundleno = 3 (0x3), region = 63 }
  0xda   :  { %305 = vsyncpa [#allocation3], 1 }
  0xdb   :  { %307 = vsyncpa [#allocation3 + $0x1], 1 }

</bundles_post_ra>
